<compile_context>
chip_gen: v5e
topology: v5e:2x2
jax: 0.10.0
libtpu: 0.0.40
codegen_flags: <defaults>
</compile_context>

<pallas_src>
import functools

import jax
import jax.numpy as jnp
from jax.experimental import pallas as pl
from jax.experimental.pallas import tpu as pltpu


_LANE = 128
_SUBLANE = 8
_MAX_LANE_TILE = 2048
_BLOCK_BYTES = 2 * 1024 * 1024       # per-block x bytes; in+out double-buffered ~4x
_MIN_GRID_BLOCKS = 8                 # >= 8 blocks -> pipelining + both v7x TCs
_LANE_CANDIDATES = (2048, 1536, 1024, 768, 512, 384, 256, 128)


def _round_up(a, b):
    return (a + b - 1) // b * b


def _sublane(itemsize):
    # Native packed sublane count: 8 for f32, 16 for bf16, 32 for int8.
    return max(_SUBLANE, 32 // max(1, itemsize))


def _row_tile(M, width, itemsize, min_blocks):
    """Row tile for an (M, width) slab.

    Multiple of the dtype-aware sublane count unless it is the full extent,
    capped by the per-block byte budget, and small enough to produce at
    least `min_blocks` grid steps whenever that is achievable.
    """
    sub = _sublane(itemsize)
    if M <= sub:
        return M
    rows_cap = max(sub, (_BLOCK_BYTES // max(1, width * itemsize)) // sub * sub)
    rows_depth = max(sub, _round_up(pl.cdiv(M, max(1, min_blocks)), sub))
    bm = min(rows_cap, rows_depth)
    if bm >= M:
        return M
    return bm


# ---------------------------------------------------------------------------
# Kernels
# ---------------------------------------------------------------------------

def _fq_kernel_per_tensor(x_ref, s_ref, z_ref, o_ref, *, qmin, qmax):
    # x_ref: (bm, W) VMEM tile.  s_ref / z_ref: (1,) f32 scalars in SMEM.
    s = s_ref[0]
    z = z_ref[0]
    x = x_ref[...].astype(jnp.float32)
    q = jnp.clip(x / s + z, qmin, qmax)
    o_ref[...] = ((jnp.round(q) - z) * s).astype(o_ref.dtype)


def _fq_kernel_per_channel_rows(x_ref, s_ref, z_ref, o_ref, *, qmin, qmax):
    # x_ref: (bm, bw) VMEM tile.  s_ref / z_ref: (bm, 1) per-row params.
    s = s_ref[...]
    z = z_ref[...]
    x = x_ref[...].astype(jnp.float32)
    q = jnp.clip(x / s + z, qmin, qmax)
    o_ref[...] = ((jnp.round(q) - z) * s).astype(o_ref.dtype)


def _fq_kernel_per_channel_3d(x_ref, s_ref, z_ref, o_ref, *, qmin, qmax):
    # x_ref: (1, bm, W) tile of a single channel.  s_ref / z_ref: (R,) SMEM.
    c = pl.program_id(0)
    s = s_ref[c]
    z = z_ref[c]
    x = x_ref[...].astype(jnp.float32)
    q = jnp.clip(x / s + z, qmin, qmax)
    o_ref[...] = ((jnp.round(q) - z) * s).astype(o_ref.dtype)


# ---------------------------------------------------------------------------
# pallas_call wrappers
# ---------------------------------------------------------------------------

def _per_tensor_slab(x2, s1, z1, qmin, qmax):
    M, W = x2.shape
    itemsize = jnp.dtype(x2.dtype).itemsize
    bm = _row_tile(M, W, itemsize, _MIN_GRID_BLOCKS)
    grid = (pl.cdiv(M, bm),)
    kernel = functools.partial(_fq_kernel_per_tensor,
                               qmin=float(qmin), qmax=float(qmax))
    return pl.pallas_call(
        kernel,
        out_shape=jax.ShapeDtypeStruct((M, W), x2.dtype),
        grid_spec=pltpu.PrefetchScalarGridSpec(
            num_scalar_prefetch=0,
            grid=grid,
            in_specs=[
                pl.BlockSpec((bm, W), lambda i: (i, 0)),
                pl.BlockSpec(memory_space=pltpu.MemorySpace.SMEM),
                pl.BlockSpec(memory_space=pltpu.MemorySpace.SMEM),
            ],
            out_specs=pl.BlockSpec((bm, W), lambda i: (i, 0)),
        ),
        compiler_params=pltpu.CompilerParams(
            dimension_semantics=("parallel",)),
    )(x2, s1, z1)


def _per_channel_3d(x3, s, z, qmin, qmax):
    R, Mk, W = x3.shape
    itemsize = jnp.dtype(x3.dtype).itemsize
    inner_min = pl.cdiv(_MIN_GRID_BLOCKS, R)      # channel axis already parallel
    bm = _row_tile(Mk, W, itemsize, inner_min)
    grid = (R, pl.cdiv(Mk, bm))
    kernel = functools.partial(_fq_kernel_per_channel_3d,
                               qmin=float(qmin), qmax=float(qmax))
    return pl.pallas_call(
        kernel,
        out_shape=jax.ShapeDtypeStruct((R, Mk, W), x3.dtype),
        grid_spec=pltpu.PrefetchScalarGridSpec(
            num_scalar_prefetch=0,
            grid=grid,
            in_specs=[
                pl.BlockSpec((1, bm, W), lambda c, i: (c, i, 0)),
                pl.BlockSpec(memory_space=pltpu.MemorySpace.SMEM),
                pl.BlockSpec(memory_space=pltpu.MemorySpace.SMEM),
            ],
            out_specs=pl.BlockSpec((1, bm, W), lambda c, i: (c, i, 0)),
        ),
        compiler_params=pltpu.CompilerParams(
            dimension_semantics=("parallel", "parallel")),
    )(x3, s, z)


def _per_channel_rows(x2, s2, z2, qmin, qmax):
    R, K = x2.shape
    itemsize = jnp.dtype(x2.dtype).itemsize
    if K <= _MAX_LANE_TILE:
        bw = K                        # full last dim: legal even if K % 128 != 0
    else:
        bw = _MAX_LANE_TILE           # multiple of 128; ragged last block masked
        for cand in _LANE_CANDIDATES:
            if K % cand == 0:
                bw = cand
                break
    col_tiles = pl.cdiv(K, bw)
    bm = _row_tile(R, bw, itemsize, pl.cdiv(_MIN_GRID_BLOCKS, col_tiles))
    grid = (pl.cdiv(R, bm), col_tiles)
    kernel = functools.partial(_fq_kernel_per_channel_rows,
                               qmin=float(qmin), qmax=float(qmax))
    return pl.pallas_call(
        kernel,
        out_shape=jax.ShapeDtypeStruct((R, K), x2.dtype),
        grid_spec=pltpu.PrefetchScalarGridSpec(
            num_scalar_prefetch=0,
            grid=grid,
            in_specs=[
                pl.BlockSpec((bm, bw), lambda i, j: (i, j)),
                pl.BlockSpec((bm, 1), lambda i, j: (i, 0)),
                pl.BlockSpec((bm, 1), lambda i, j: (i, 0)),
            ],
            out_specs=pl.BlockSpec((bm, bw), lambda i, j: (i, j)),
        ),
        compiler_params=pltpu.CompilerParams(
            dimension_semantics=("parallel", "parallel")),
    )(x2, s2, z2)


# ---------------------------------------------------------------------------
# High-level wrappers
# ---------------------------------------------------------------------------

def _fake_quant_per_tensor(x, scale, zero_point, qmin, qmax):
    if scale.size != 1 or zero_point.size != 1:
        raise ValueError("per-tensor fake-quant expects scalar scale/zero_point")
    orig_shape = x.shape
    n = x.size
    s1 = jnp.asarray(scale, jnp.float32).reshape(1)
    z1 = jnp.asarray(zero_point, jnp.float32).reshape(1)
    flat = x.reshape(-1)

    # Lane-dense slab width: prefer an exact divisor (no pad) with >= 8 rows.
    W = None
    for cand in _LANE_CANDIDATES:
        if n % cand == 0 and n // cand >= _SUBLANE:
            W = cand
            break
    if W is None:
        for cand in _LANE_CANDIDATES:
            if n % cand == 0:
                W = cand
                break
    if W is not None:
        out = _per_tensor_slab(flat.reshape(n // W, W), s1, z1, qmin, qmax)
        return out.reshape(orig_shape)

    bulk = (n // _LANE) * _LANE
    if bulk == 0:
        # Tiny tensor (< 128 elements): single full-extent block.
        out = _per_tensor_slab(flat.reshape(1, n), s1, z1, qmin, qmax)
        return out.reshape(orig_shape)

    # Rare path: numel has no 128 factor.  Pallas handles the 128-aligned
    # bulk; the <128-element tail is done in plain jnp (negligible bytes).
    # TODO(synk): fold the tail into the slab kernel with a masked store to
    # also drop the concatenate pass on this rare path.
    head = _per_tensor_slab(flat[:bulk].reshape(bulk // _LANE, _LANE),
                            s1, z1, qmin, qmax)
    s = s1[0]
    z = z1[0]
    tail = flat[bulk:].astype(jnp.float32)
    tail = ((jnp.round(jnp.clip(tail / s + z, qmin, qmax)) - z) * s).astype(x.dtype)
    return jnp.concatenate([head.reshape(-1), tail]).reshape(orig_shape)


def _fake_quant_per_channel(x, scale, zero_point, qmin, qmax):
    orig_shape = x.shape
    R = orig_shape[0]
    K = x.size // R
    if scale.size != R or zero_point.size != R:
        raise ValueError("per-channel fake-quant expects one scale/zero_point "
                         "per channel (dim 0)")
    itemsize = jnp.dtype(x.dtype).itemsize

    # Path A: big channels, or too few channels to fill sublanes by grouping:
    # tile *inside* each channel on a lane-dense 3-D slab.
    if K % _LANE == 0 and K > 0 and (R < _SUBLANE or K * itemsize >= _BLOCK_BYTES // 2):
        W = _LANE
        for cand in _LANE_CANDIDATES:
            if K % cand == 0:
                W = cand
                break
        x3 = x.reshape(R, K // W, W)
        s = jnp.asarray(scale, jnp.float32).reshape(R)
        z = jnp.asarray(zero_point, jnp.float32).reshape(R)
        out = _per_channel_3d(x3, s, z, qmin, qmax)
        return out.reshape(orig_shape)

    # Path B: many small channels -> group channels along the sublane axis.
    # TODO(synk): when K % 128 != 0 the ragged lane edge stores as masked vst;
    # fold channels into lanes for fully dense stores if this ever dominates.
    x2 = x.reshape(R, K)
    s2 = jnp.asarray(scale, jnp.float32).reshape(R, 1)
    z2 = jnp.asarray(zero_point, jnp.float32).reshape(R, 1)
    out = _per_channel_rows(x2, s2, z2, qmin, qmax)
    return out.reshape(orig_shape)


def vit_fake_quantize(x, scale, zero_point, *, quant_min=-128, quant_max=127,
                      is_per_channel=False, fake_quant_enabled=True):
    """Pallas implementation of VitFakeQuantizer.forward (value path).

    gradscale / roundpass are gradient-only (STE) tricks; their forward value
    is identity / round, which is what is implemented here.
    """
    if not fake_quant_enabled:
        return x
    scale = jnp.asarray(scale)
    zero_point = jnp.asarray(zero_point)
    if is_per_channel:
        return _fake_quant_per_channel(x, scale, zero_point, quant_min, quant_max)
    return _fake_quant_per_tensor(x, scale, zero_point, quant_min, quant_max)


# ---------------------------------------------------------------------------
# Pure-JAX reference (matches quantize_ forward values)
# ---------------------------------------------------------------------------

def _reference(x, scale, zero_point, quant_min, quant_max, is_per_channel):
    if is_per_channel:
        new_shape = [1] * x.ndim
        new_shape[0] = -1
        s = jnp.asarray(scale, jnp.float32).reshape(new_shape)
        z = jnp.asarray(zero_point, jnp.float32).reshape(new_shape)
    else:
        s = jnp.asarray(scale, jnp.float32)
        z = jnp.asarray(zero_point, jnp.float32)
    q = x.astype(jnp.float32) / s + z
    q = jnp.clip(q, quant_min, quant_max)
    q = jnp.round(q)
    return ((q - z) * s).astype(x.dtype)


if __name__ == "__main__":
    key = jax.random.PRNGKey(0)
    quant_min, quant_max = -128, 127

    # --- Per-tensor path (module defaults: is_per_channel=False -> outc=1) ---
    x = jax.random.normal(key, (2, 4, 16, 16), dtype=jnp.float32) * 10.0
    scale = jnp.full((1,), 0.1, dtype=jnp.float32)
    zero_point = jnp.full((1,), 3, dtype=jnp.int32)
    y = vit_fake_quantize(x, scale, zero_point,
                          quant_min=quant_min, quant_max=quant_max,
                          is_per_channel=False)
    y = jax.block_until_ready(y)
    y_ref = _reference(x, scale, zero_point, quant_min, quant_max, False)
    assert y.shape == x.shape and y.dtype == x.dtype
    assert jnp.allclose(y, y_ref, atol=1e-5), "per-tensor mismatch vs reference"

    # --- Per-channel path (few channels -> 3-D per-channel-slab path) ---
    scale_c = jnp.array([0.5, 1.7], dtype=jnp.float32)
    zp_c = jnp.array([3, -2], dtype=jnp.int32)
    y2 = vit_fake_quantize(x, scale_c, zp_c,
                           quant_min=quant_min, quant_max=quant_max,
                           is_per_channel=True)
    y2 = jax.block_until_ready(y2)
    y2_ref = _reference(x, scale_c, zp_c, quant_min, quant_max, True)
    assert y2.shape == x.shape and y2.dtype == x.dtype
    assert jnp.allclose(y2, y2_ref, atol=1e-5), "per-channel(3d) mismatch vs reference"

    # --- Per-channel path (many small ragged channels -> row-grouped path) ---
    xc = jax.random.normal(jax.random.PRNGKey(1), (16, 4, 12), dtype=jnp.float32) * 5.0
    scale_c2 = jnp.linspace(0.05, 0.8, 16).astype(jnp.float32)
    zp_c2 = jnp.arange(-8, 8, dtype=jnp.int32)
    y3 = vit_fake_quantize(xc, scale_c2, zp_c2,
                           quant_min=quant_min, quant_max=quant_max,
                           is_per_channel=True)
    y3 = jax.block_until_ready(y3)
    y3_ref = _reference(xc, scale_c2, zp_c2, quant_min, quant_max, True)
    assert jnp.allclose(y3, y3_ref, atol=1e-5), "per-channel(rows) mismatch vs reference"

    # --- Per-tensor path, numel with no 128 factor (bulk + tail path) ---
    xo = jax.random.normal(jax.random.PRNGKey(2), (3, 5, 67), dtype=jnp.float32) * 7.0
    y4 = vit_fake_quantize(xo, scale, zero_point,
                           quant_min=quant_min, quant_max=quant_max,
                           is_per_channel=False)
    y4 = jax.block_until_ready(y4)
    y4_ref = _reference(xo, scale, zero_point, quant_min, quant_max, False)
    assert y4.shape == xo.shape
    assert jnp.allclose(y4, y4_ref, atol=1e-5), "odd-size per-tensor mismatch vs reference"

    # --- Per-tensor path, bf16 input (dtype-aware tiling) ---
    xb = (jax.random.normal(jax.random.PRNGKey(3), (4, 8, 64)) * 6.0).astype(jnp.bfloat16)
    y5 = vit_fake_quantize(xb, scale, zero_point,
                           quant_min=quant_min, quant_max=quant_max,
                           is_per_channel=False)
    y5 = jax.block_until_ready(y5)
    y5_ref = _reference(xb, scale, zero_point, quant_min, quant_max, False)
    assert y5.dtype == jnp.bfloat16
    assert jnp.allclose(y5.astype(jnp.float32), y5_ref.astype(jnp.float32), atol=1e-2), \
        "bf16 per-tensor mismatch vs reference"

    print("KERNEL_OK")
</pallas_src>

<mosaic_0001>
module attributes {stable_mosaic.version = 11 : i64} {
  func.func @_fq_kernel_per_tensor(%arg0: i32, %arg1: memref<8x256xf32, #tpu.memory_space<vmem>>, %arg2: memref<1xf32, #tpu.memory_space<smem>>, %arg3: memref<1xf32, #tpu.memory_space<smem>>, %arg4: memref<8x256xf32, #tpu.memory_space<vmem>>) attributes {dimension_semantics = [#tpu.dimension_semantics<parallel>], iteration_bounds = array<i64: 1>, scalar_prefetch = 0 : i64, scratch_operands = 0 : i64, tpu.core_type = #tpu.core_type<tc>, window_params = [{transform_indices = @transform_0, window_bounds = array<i64: 8, 256>}, {transform_indices = @transform_1, window_bounds = array<i64: 1>}, {transform_indices = @transform_2, window_bounds = array<i64: 1>}, {transform_indices = @transform_3, window_bounds = array<i64: 8, 256>}]} {
    %c0 = arith.constant 0 : index
    %0 = memref.load %arg2[%c0] : memref<1xf32, #tpu.memory_space<smem>>
    %c0_0 = arith.constant 0 : index
    %1 = memref.load %arg3[%c0_0] : memref<1xf32, #tpu.memory_space<smem>>
    %c0_1 = arith.constant 0 : index
    %c0_2 = arith.constant 0 : index
    %2 = vector.load %arg1[%c0_1, %c0_2] : memref<8x256xf32, #tpu.memory_space<vmem>>, vector<8x256xf32>
    %3 = vector.broadcast %0 : f32 to vector<8x256xf32>
    %4 = arith.divf %2, %3 : vector<8x256xf32>
    %5 = vector.broadcast %1 : f32 to vector<8x256xf32>
    %6 = arith.addf %4, %5 : vector<8x256xf32>
    %cst = arith.constant -1.280000e+02 : f32
    %cst_3 = arith.constant 1.270000e+02 : f32
    %7 = vector.broadcast %cst : f32 to vector<8x256xf32>
    %8 = arith.maximumf %7, %6 : vector<8x256xf32>
    %9 = vector.broadcast %cst_3 : f32 to vector<8x256xf32>
    %10 = arith.minimumf %9, %8 : vector<8x256xf32>
    %11 = math.roundeven %10 : vector<8x256xf32>
    %12 = vector.broadcast %1 : f32 to vector<8x256xf32>
    %13 = arith.subf %11, %12 : vector<8x256xf32>
    %14 = vector.broadcast %0 : f32 to vector<8x256xf32>
    %15 = arith.mulf %13, %14 : vector<8x256xf32>
    %c0_4 = arith.constant 0 : index
    %c0_5 = arith.constant 0 : index
    %16 = vector.load %arg4[%c0_4, %c0_5] : memref<8x256xf32, #tpu.memory_space<vmem>>, vector<8x256xf32>
    tpu.vector_store %arg4[%c0_4, %c0_5], %15 {strides = array<i32>} : memref<8x256xf32, #tpu.memory_space<vmem>>, vector<8x256xf32>,
    return
  }
  func.func @transform_0(%arg0: i32) -> (i32, i32) {
    %c0_i32 = arith.constant 0 : i32
    %c0_i32_0 = arith.constant 0 : i32
    return %arg0, %c0_i32 : i32, i32
  }
  func.func @transform_1(%arg0: i32) -> i32 {
    %c0_i32 = arith.constant 0 : i32
    %c0_i32_0 = arith.constant 0 : i32
    return %c0_i32 : i32
  }
  func.func @transform_2(%arg0: i32) -> i32 {
    %c0_i32 = arith.constant 0 : i32
    %c0_i32_0 = arith.constant 0 : i32
    return %c0_i32 : i32
  }
  func.func @transform_3(%arg0: i32) -> (i32, i32) {
    %c0_i32 = arith.constant 0 : i32
    %c0_i32_0 = arith.constant 0 : i32
    return %arg0, %c0_i32 : i32, i32
  }
}

</mosaic_0001>

<bundles_post_ra>
// kernel: tpu_custom_call.1
= control target key start
LH: loop header
LB: loop body
LE: loop exit
PB: predicated region body
PF: predicated region fallthrough
CT: control target
= control target key end

     0   :  { %10 = vsyncpa [#allocation5], 0  ;;  %s190_s0 = inlined_call_operand.hbm [shape: f32[8,256], index: 0, kind: input, shape index: {}]   ;;  %s191_s1 = inlined_call_operand.<no memory space> [shape: f32[1], index: 1, kind: input, shape index: {}]   ;;  %s192_s2 = inlined_call_operand.<no memory space> [shape: f32[1], index: 2, kind: input, shape index: {}]   ;;  %s193_s3 = inlined_call_operand.hbm [shape: f32[8,256], index: 3, kind: output, shape index: {}]  }
   0x1   :  { %11 = vsyncpa [#allocation6], 0  ;;  %s17_s14 = sshll.u32 %s190_s0, 4  ;;  %s156_s15 = smov [#allocation4]   ;;  %s18_s14 = int_to_ptr.hbm [resolvable:$true] %s17_s14 }
   0x2   :  { %s19_s16 = sshll.u32 %s156_s15, 4  ;;  %s20_s16 = int_to_ptr.vmem [resolvable:$true] %s19_s16 }
   0x3   :  { %22 = dma.hbm_to_vmem [thread:$0]  %s18_s14, 256, %s20_s16, [#allocation5]  }
   0x4   :  { %152 = dma.done.wait [#allocation5], 256  }
   0x5   :  { %153 = vsyncadd [#allocation5], 4294967040  ;;  %v35_v0 = vstv %s191_s1  ;;  %v33_v9 = vld [vmem:[#allocation4] sm:$0xff]  ;;  %v34_v10 = vld [vmem:[#allocation4 + $0x8] sm:$0xff]  ;;  %v52_v13 = vstv %s192_s2  ;;  %s157_s1 = smov [#allocation7]   ;;  %s74_s22 = sshll.u32 %s193_s3, 4  ;;  %s75_s22 = int_to_ptr.hbm [resolvable:$true] %s74_s22 }
   0x6   :  { %102 = vrcp.f32 %v35_v0  ;;  %v47_v3 = vand.u32 2147483648, %v35_v0  ;;  %vm41_vm0 = vweird.f32 %v35_v0  ;;  %v45_v5 = vand.u32 2147483647, %v35_v0  ;;  %s72_s2 = sshll.u32 %s157_s1, 4  ;;  %s73_s2 = int_to_ptr.vmem [resolvable:$true] %s72_s2 }
   0x8   :  { %v48_v7 = vor.u32 1.1754944e-38, %v47_v3  ;;  %vm46_vm3 = vcmp.eq.f32.partialorder %v45_v5, 8.507059e+37 }
   0xc   :  { %v103_v1 = vpop.eup %102 }
   0xd   :  { %v37_v2 = vmul.f32 %v103_v1, %v35_v0  ;;  %vm42_vm1 = vweird.f32 %v103_v1 }
   0xe   :  { %vm43_vm2 = vmor %vm41_vm0, %vm42_vm1 }
   0xf   :  { %v38_v4 = vsub.f32 1.0, %v37_v2 }
  0x11   :  { %v39_v6 = vmul.f32 %v103_v1, %v38_v4 }
  0x13   :  { %v40_v8 = vadd.f32 %v103_v1, %v39_v6 }
  0x15   :  { %v44_v11 = vsel %vm43_vm2, %v103_v1, %v40_v8 }
  0x16   :  { %v49_v12 = vsel %vm46_vm3, %v48_v7, %v44_v11 }
  0x17   :  { %v50_v14 = vmul.f32 %v49_v12, %v33_v9  ;;  %v51_v15 = vmul.f32 %v49_v12, %v34_v10 }
  0x19   :  { %v53_v16 = vadd.f32 %v52_v13, %v50_v14  ;;  %v54_v17 = vadd.f32 %v52_v13, %v51_v15 }
  0x1b   :  { %v55_v18 = vmax.f32 %v53_v16, -128.0  ;;  %v56_v19 = vmax.f32 %v54_v17, -128.0 }
  0x1d   :  { %v57_v20 = vmin.f32 %v55_v18, 127.0  ;;  %v58_v21 = vmin.f32 %v56_v19, 127.0 }
  0x1f   :  { %v86_v22 = vcvt.f32.s32 %v57_v20  ;;  %v84_v23 = vand.u32 2147483647, %v57_v20  ;;  %v94_v24 = vcvt.f32.s32 %v58_v21  ;;  %v89_v26 = vand.u32 2147483648, %v57_v20 }
  0x20   :  { %v92_v27 = vand.u32 2147483647, %v58_v21  ;;  %v97_v29 = vand.u32 2147483648, %v58_v21 }
  0x21   :  { %v87_v25 = vcvt.s32.f32 %v86_v22  ;;  %v95_v28 = vcvt.s32.f32 %v94_v24  ;;  %vm85_vm4 = vcmp.lt.f32.partialorder %v84_v23, 8388608.0 }
  0x22   :  { %vm93_vm5 = vcmp.lt.f32.partialorder %v92_v27, 8388608.0 }
  0x23   :  { %v88_v30 = vand.u32 2147483647, %v87_v25  ;;  %v96_v31 = vand.u32 2147483647, %v95_v28 }
  0x25   :  { %v90_v32 = vor.u32 %v89_v26, %v88_v30  ;;  %v98_v33 = vor.u32 %v97_v29, %v96_v31 }
  0x27   :  { %v91_v34 = vsel %vm85_vm4, %v90_v32, %v57_v20  ;;  %v99_v36 = vsel %vm93_vm5, %v98_v33, %v58_v21 }
  0x28   :  { %v61_v35 = vsub.f32 %v91_v34, %v52_v13  ;;  %v62_v37 = vsub.f32 %v99_v36, %v52_v13 }
  0x2a   :  { %v63_v38 = vmul.f32 %v61_v35, %v35_v0  ;;  %v64_v39 = vmul.f32 %v62_v37, %v35_v0 }
  0x2c   :  { %65 = vst [vmem:[#allocation7] sm:$0xff] %v63_v38 }
  0x2d   :  { %66 = vst [vmem:[#allocation7 + $0x8] sm:$0xff] %v64_v39 }
  0x2e   :  { %77 = dma.vmem_to_hbm [thread:$0]  %s73_s2, 256, %s75_s22, [#allocation6]  }
  0x2f   :  { %154 = dma.done.wait [#allocation6], 256  }
  0x30   :  { %155 = vsyncadd [#allocation6], 4294967040 }
  0x31   :  { %82 = vsyncpa [#allocation5], 1 }
  0x32   :  { %83 = vsyncpa [#allocation6], 1 }

</bundles_post_ra>
